<compile_context>
chip_gen: v5e
topology: v5e:2x2
jax: 0.10.0
libtpu: 0.0.40
codegen_flags: <defaults>
</compile_context>

<pallas_src>
import jax
import jax.numpy as jnp
from jax.experimental import pallas as pl
from jax.experimental.pallas import tpu as pltpu


def _round_up(x, m):
    return (x + m - 1) // m * m


def _cdiv(a, b):
    return (a + b - 1) // b


def _tpu_vmem_bytes():
    """Physical VMEM per TensorCore; conservative fallback if query fails."""
    try:
        v = int(pltpu.get_tpu_info().vmem_capacity_bytes)
        if v > 0:
            return v
    except Exception:
        pass
    return 64 * 1024 * 1024  # v7x per-TC size (most restrictive generation)


def _vmem_estimate(td, ts, in_pad, out_pad, out_bytes):
    """Rough double-buffered VMEM footprint of the kernel in bytes."""
    b = 0
    b += 2 * td * ts * 2               # adjacency blocks (bf16, double-buffered)
    b += 2 * ts * in_pad * 2           # x_src blocks
    b += 2 * in_pad * out_pad * 2      # W[r] blocks
    b += 2 * td * in_pad * 2           # x_dst blocks
    b += 2 * in_pad * out_pad * 2      # loop weight
    b += 2 * out_pad * 4               # bias
    b += 2 * td * out_pad * out_bytes  # output blocks
    b += td * out_pad * 4              # f32 output accumulator scratch
    b += td * in_pad * 4               # f32 (A @ X) scratch
    return b


def _relgraphconv_kernel(flags_ref, rowflags_ref, rred_ref, kred_ref,   # SMEM prefetch
                         adj_ref, xsrc_ref, w_ref, xdst_ref, loopw_ref, bias_ref,
                         out_ref,
                         acc_ref, ax_ref):
    """Grid = (dst_tiles [parallel], num_rels, src_tiles) — last two are reductions.

    Per step:  ax += A[r, dst_tile, src_tile] @ X[src_tile]      (skipped if block empty)
    At the last src tile of a relation:  acc += ax.bf16 @ W[r]   (skipped if row empty)
    First reduction step seeds acc with bias + X_dst @ W_loop; last step ReLUs + stores.
    """
    i = pl.program_id(0)            # dst tile   (parallel)
    r = pl.program_id(1)            # relation   (reduction)
    k = pl.program_id(2)            # src tile   (reduction)
    num_rels = pl.num_programs(1)
    src_tiles = pl.num_programs(2)

    # Seed the resident f32 output accumulator with bias + self-loop term; this
    # overlaps with the relation/src-tile pipeline.
    @pl.when(jnp.logical_and(r == 0, k == 0))
    def _init():
        acc_ref[...] = bias_ref[...] + jnp.dot(
            xdst_ref[...], loopw_ref[...], preferred_element_type=jnp.float32)

    # Per-relation (A @ X) accumulator: reset at the first src tile of each relation.
    @pl.when(k == 0)
    def _reset_ax():
        ax_ref[...] = jnp.zeros_like(ax_ref)

    # Sparsity skip (compute): only touch the MXU when the adjacency block has edges.
    flag = flags_ref[(i * num_rels + r) * src_tiles + k]

    @pl.when(flag != 0)
    def _accum_ax():
        # (td, ts) @ (ts, in_pad): K = ts keeps the MXU well fed even when
        # in_feat is small; f32 accumulation.
        ax_ref[...] += jnp.dot(adj_ref[0], xsrc_ref[...],
                               preferred_element_type=jnp.float32)

    # Apply the typed-linear weight W[r] exactly once per (dst_tile, relation);
    # the bf16 cast is on the tiny (td, in_pad) array, not a (ts, out_pad) temp.
    rowflag = rowflags_ref[i * num_rels + r]

    @pl.when(jnp.logical_and(k == src_tiles - 1, rowflag != 0))
    def _apply_w():
        acc_ref[...] += jnp.dot(ax_ref[...].astype(w_ref.dtype), w_ref[0],
                                preferred_element_type=jnp.float32)

    # Finalize: ReLU + cast + lane-dense store.
    @pl.when(jnp.logical_and(r == num_rels - 1, k == src_tiles - 1))
    def _finalize():
        out_ref[...] = jnp.maximum(acc_ref[...], 0.0).astype(out_ref.dtype)
        # TODO(synk): dropout with p > 0 would need pltpu.prng_* here; p=0.0 is identity.


def rel_graph_conv(feat, src, dst, etypes, norm, weight, loop_weight, h_bias, *,
                   num_dst_nodes=None, dst_tile_cap=None, src_tile_cap=None):
    """feat: (N_src, in_feat); src/dst/etypes/norm: (E,) edge list; weight:
    (num_rels, in_feat, out_feat); loop_weight: (in_feat, out_feat);
    h_bias: (out_feat,).  Returns (N_dst, out_feat).

    NOTE: the self-loop uses feat[:num_dst] (DGL block convention: dst nodes are
    a prefix of the src feature matrix)."""
    n_src = feat.shape[0]
    num_dst = n_src if num_dst_nodes is None else int(num_dst_nodes)
    num_rels, in_feat, out_feat = weight.shape
    out_dtype = feat.dtype
    if norm is None:
        norm = jnp.ones(src.shape, jnp.float32)

    # ---- generation-aware tile caps / VMEM budget ---------------------------
    vmem_bytes = _tpu_vmem_bytes()
    big_vmem = vmem_bytes >= 96 * 1024 * 1024       # v5e/v6e (128 MiB) vs v7x (64 MiB)
    if dst_tile_cap is None:
        dst_tile_cap = 1024 if big_vmem else 512
    if src_tile_cap is None:
        src_tile_cap = 2048 if big_vmem else 1024
    vmem_limit = min(vmem_bytes * 3 // 4, 96 * 1024 * 1024)

    # ---- tiling / padding (lane-dense output, (8,128)-aligned tiles) --------
    in_pad = _round_up(in_feat, 8)
    out_pad = _round_up(out_feat, 128)
    td = min(dst_tile_cap, _round_up(num_dst, 8))
    # Keep >= 2 dst tiles so the "parallel" axis spans both v7x TensorCores.
    if _cdiv(num_dst, td) < 2 and td > 8:
        td = _round_up(_cdiv(td, 2), 8)
    ts = min(src_tile_cap, _round_up(n_src, 128))
    # Shrink tiles until the (double-buffered) footprint fits the VMEM budget.
    out_bytes = jnp.dtype(out_dtype).itemsize
    while _vmem_estimate(td, ts, in_pad, out_pad, out_bytes) > vmem_limit * 8 // 10:
        if ts > 128:
            ts = max(128, _round_up(ts // 2, 128))
        elif td > 8:
            td = max(8, _round_up(td // 2, 8))
        else:
            break
    n_dst_p = _round_up(num_dst, td)
    n_src_p = _round_up(n_src, ts)
    dst_tiles = n_dst_p // td
    src_tiles = n_src_p // ts
    # TODO(synk): for very wide layers, a 4th grid axis tiling out_pad (W / loop
    # weight / bias / out / acc) would bound VMEM independently of layer width.

    # ---- dense per-relation adjacency (norms folded in), padded, bf16 -------
    # Norm sums accumulate in f32, then cast once to bf16 for the MXU stream.
    cdt = jnp.bfloat16
    adj = jnp.zeros((num_rels, n_dst_p, n_src_p), jnp.float32)
    adj = adj.at[etypes, dst, src].add(norm.astype(jnp.float32))
    adj = adj.astype(cdt)
    x_src = jnp.zeros((n_src_p, in_pad), cdt).at[:n_src, :in_feat].set(feat.astype(cdt))
    x_dst = jnp.zeros((n_dst_p, in_pad), cdt).at[:num_dst, :in_feat].set(
        feat[:num_dst].astype(cdt))
    w_p = jnp.zeros((num_rels, in_pad, out_pad), cdt).at[:, :in_feat, :out_feat].set(
        weight.astype(cdt))
    lw_p = jnp.zeros((in_pad, out_pad), cdt).at[:in_feat, :out_feat].set(
        loop_weight.astype(cdt))
    b_p = jnp.zeros((1, out_pad), jnp.float32).at[0, :out_feat].set(
        h_bias.astype(jnp.float32))

    # ---- block-sparsity metadata from the edge list (O(E), no dense pre-pass)
    blk = jnp.zeros((dst_tiles, num_rels, src_tiles), jnp.int32)
    blk = blk.at[dst // td, etypes, src // ts].add(1)
    flags = (blk != 0).astype(jnp.int32).reshape(-1)                 # per (i, r, k)
    row_flags = (blk.sum(axis=2) > 0).astype(jnp.int32).reshape(-1)  # per (i, r)
    # DMA-skip redirect: for zero blocks the adjacency / x_src index_maps return
    # the most recently fetched nonzero block's indices, so Pallas elides the copy
    # (unchanged block index between consecutive grid steps => no re-DMA).
    lin = jnp.arange(num_rels * src_tiles, dtype=jnp.int32)
    marked = jnp.where(blk.reshape(dst_tiles, -1) != 0, lin[None, :], -1)
    ffill = jnp.maximum(jax.lax.cummax(marked, axis=1), 0)
    rred = (ffill // src_tiles).reshape(-1).astype(jnp.int32)
    kred = (ffill % src_tiles).reshape(-1).astype(jnp.int32)

    R, S = num_rels, src_tiles

    def _adj_map(i, r, k, fl, rf, rr, kk):
        n = (i * R + r) * S + k
        return (rr[n], i, kk[n])

    def _xsrc_map(i, r, k, fl, rf, rr, kk):
        return (kk[(i * R + r) * S + k], 0)

    out_p = pl.pallas_call(
        _relgraphconv_kernel,
        out_shape=jax.ShapeDtypeStruct((n_dst_p, out_pad), out_dtype),
        grid_spec=pltpu.PrefetchScalarGridSpec(
            num_scalar_prefetch=4,
            grid=(dst_tiles, num_rels, src_tiles),
            in_specs=[
                # A[r, dst_tile, src_tile] (redirected for empty blocks)
                pl.BlockSpec((1, td, ts), _adj_map),
                # X (src side, redirected for empty blocks)
                pl.BlockSpec((ts, in_pad), _xsrc_map),
                # W[r] — fetched once per (dst_tile, relation)
                pl.BlockSpec((1, in_pad, out_pad),
                             lambda i, r, k, fl, rf, rr, kk: (r, 0, 0)),
                # X (dst side, self loop)
                pl.BlockSpec((td, in_pad), lambda i, r, k, fl, rf, rr, kk: (i, 0)),
                # loop weight (grid-invariant)
                pl.BlockSpec((in_pad, out_pad), lambda i, r, k, fl, rf, rr, kk: (0, 0)),
                # bias (grid-invariant)
                pl.BlockSpec((1, out_pad), lambda i, r, k, fl, rf, rr, kk: (0, 0)),
            ],
            out_specs=pl.BlockSpec((td, out_pad), lambda i, r, k, fl, rf, rr, kk: (i, 0)),
            scratch_shapes=[pltpu.VMEM((td, out_pad), jnp.float32),   # output acc
                            pltpu.VMEM((td, in_pad), jnp.float32)],   # A @ X acc
        ),
        compiler_params=pltpu.CompilerParams(
            # dst-tile axis is parallel (megacore on v7x); rel/src are reductions.
            dimension_semantics=("parallel", "arbitrary", "arbitrary"),
            vmem_limit_bytes=vmem_limit,
        ),
        # TODO(synk): pipeline_mode=pl.Buffered(3) on the adjacency spec would hide
        # bursty DMA after long runs of skipped blocks; left at default depth here.
    )(flags, row_flags, rred, kred, adj, x_src, w_p, x_dst, lw_p, b_p)

    return out_p[:num_dst, :out_feat]


if __name__ == "__main__":
    key = jax.random.PRNGKey(0)
    (k_feat, k_w, k_loop, k_bias, k_src, k_dst, k_et, k_norm
     ) = jax.random.split(key, 8)

    # Small synthetic graph / layer sizes.
    num_nodes = 64           # num_src_nodes == num_dst_nodes
    in_feat = 32
    out_feat = 64
    num_rels = 3
    num_edges = 256

    feat = jax.random.normal(k_feat, (num_nodes, in_feat), dtype=jnp.float32)

    # TypedLinear (regularizer=None): per-relation weight (num_rels, in, out).
    w_bound = (6.0 / (in_feat + out_feat)) ** 0.5
    weight = jax.random.uniform(k_w, (num_rels, in_feat, out_feat),
                                minval=-w_bound, maxval=w_bound, dtype=jnp.float32)

    # loop_weight: xavier_uniform with relu gain sqrt(2).
    gain = 2.0 ** 0.5
    l_bound = gain * (6.0 / (in_feat + out_feat)) ** 0.5
    loop_weight = jax.random.uniform(k_loop, (in_feat, out_feat),
                                     minval=-l_bound, maxval=l_bound,
                                     dtype=jnp.float32)

    # Module initializes h_bias to zeros; nonzero here exercises the bias path.
    h_bias = 0.1 * jax.random.normal(k_bias, (out_feat,), dtype=jnp.float32)

    # Random edge list with relation types and per-edge norm.
    src = jax.random.randint(k_src, (num_edges,), 0, num_nodes)
    dst = jax.random.randint(k_dst, (num_edges,), 0, num_nodes)
    etypes = jax.random.randint(k_et, (num_edges,), 0, num_rels)
    norm = jax.random.uniform(k_norm, (num_edges,), dtype=jnp.float32)

    out = rel_graph_conv(feat, src, dst, etypes, norm, weight, loop_weight, h_bias)
    out = jax.block_until_ready(out)
    assert out.shape == (num_nodes, out_feat)

    # --- Reference 1: mirror the kernel's bf16 quantization and (A@X)@W order.
    q = lambda a: a.astype(jnp.bfloat16).astype(jnp.float32)
    adj_d = jnp.zeros((num_rels, num_nodes, num_nodes), jnp.float32)
    adj_d = adj_d.at[etypes, dst, src].add(norm)
    ax = jnp.einsum("rds,si->rdi", q(adj_d), q(feat))
    h_mir = jnp.einsum("rdi,rio->do", q(ax), q(weight))
    h_mir = h_mir + h_bias[None, :] + q(feat) @ q(loop_weight)
    h_mir = jnp.maximum(h_mir, 0.0)
    assert jnp.allclose(out, h_mir, atol=3e-2, rtol=3e-2), (
        float(jnp.max(jnp.abs(out - h_mir))))

    # --- Reference 2: pure-f32 edge-wise forward (semantic check, loose due to
    #     bf16 operands inside the kernel). ---
    m = jnp.einsum("ei,eio->eo", feat[src], weight[etypes]) * norm[:, None]
    h_ref = jnp.zeros((num_nodes, out_feat), jnp.float32).at[dst].add(m)
    h_ref = h_ref + h_bias[None, :] + feat @ loop_weight
    h_ref = jnp.maximum(h_ref, 0.0)
    assert jnp.allclose(out, h_ref, atol=1e-1, rtol=1e-1), (
        float(jnp.max(jnp.abs(out - h_ref))))

    print("KERNEL_OK")
</pallas_src>

<mosaic_0001>
module attributes {stable_mosaic.version = 11 : i64} {
  func.func @_relgraphconv_kernel(%arg0: i32, %arg1: i32, %arg2: i32, %arg3: memref<6xi32, #tpu.memory_space<smem>>, %arg4: memref<6xi32, #tpu.memory_space<smem>>, %arg5: memref<6xi32, #tpu.memory_space<smem>>, %arg6: memref<6xi32, #tpu.memory_space<smem>>, %arg7: memref<1x32x128xbf16, #tpu.memory_space<vmem>>, %arg8: memref<128x32xbf16, #tpu.memory_space<vmem>>, %arg9: memref<1x32x128xbf16, #tpu.memory_space<vmem>>, %arg10: memref<32x32xbf16, #tpu.memory_space<vmem>>, %arg11: memref<32x128xbf16, #tpu.memory_space<vmem>>, %arg12: memref<1x128xf32, #tpu.memory_space<vmem>>, %arg13: memref<32x128xf32, #tpu.memory_space<vmem>>, %arg14: memref<32x128xf32, #tpu.memory_space<vmem>>, %arg15: memref<32x32xf32, #tpu.memory_space<vmem>>) attributes {dimension_semantics = [#tpu.dimension_semantics<parallel>, #tpu.dimension_semantics<arbitrary>, #tpu.dimension_semantics<arbitrary>], iteration_bounds = array<i64: 2, 3, 1>, scalar_prefetch = 4 : i64, scratch_operands = 2 : i64, tpu.core_type = #tpu.core_type<tc>, window_params = [{transform_indices = @transform_0, window_bounds = array<i64: 1, 32, 128>}, {transform_indices = @transform_1, window_bounds = array<i64: 128, 32>}, {transform_indices = @transform_2, window_bounds = array<i64: 1, 32, 128>}, {transform_indices = @transform_3, window_bounds = array<i64: 32, 32>}, {pipeline_mode = #tpu.pipeline_mode<synchronous>, transform_indices = @transform_4, window_bounds = array<i64: 32, 128>}, {pipeline_mode = #tpu.pipeline_mode<synchronous>, transform_indices = @transform_5, window_bounds = array<i64: 1, 128>}, {transform_indices = @transform_6, window_bounds = array<i64: 32, 128>}]} {
    %c0_i32 = arith.constant 0 : i32
    %0 = arith.cmpi eq, %arg1, %c0_i32 : i32
    %c0_i32_0 = arith.constant 0 : i32
    %1 = arith.cmpi eq, %arg2, %c0_i32_0 : i32
    %2 = arith.andi %0, %1 : i1
    %3 = arith.extui %2 : i1 to i32
    %c0_i32_1 = arith.constant 0 : i32
    %4 = arith.cmpi ne, %3, %c0_i32_1 : i32
    scf.if %4 {
      %c0 = arith.constant 0 : index
      %c0_12 = arith.constant 0 : index
      %31 = vector.load %arg12[%c0, %c0_12] : memref<1x128xf32, #tpu.memory_space<vmem>>, vector<1x128xf32>
      %c0_13 = arith.constant 0 : index
      %c0_14 = arith.constant 0 : index
      %32 = vector.load %arg10[%c0_13, %c0_14] : memref<32x32xbf16, #tpu.memory_space<vmem>>, vector<32x32xbf16>
      %c0_15 = arith.constant 0 : index
      %c0_16 = arith.constant 0 : index
      %33 = vector.load %arg11[%c0_15, %c0_16] : memref<32x128xbf16, #tpu.memory_space<vmem>>, vector<32x128xbf16>
      %cst = arith.constant dense<0.000000e+00> : vector<32x128xf32>
      %34 = tpu.matmul %32, %33, %cst {dimension_numbers = #tpu.dot_dimension_numbers<[1], [0], [0], [1], [0, 0, 1, 1], [], []>} : vector<32x32xbf16>, vector<32x128xbf16>, vector<32x128xf32> -> vector<32x128xf32>
      %35 = vector.broadcast %31 : vector<1x128xf32> to vector<32x128xf32>
      %36 = arith.addf %35, %34 : vector<32x128xf32>
      %c0_17 = arith.constant 0 : index
      %c0_18 = arith.constant 0 : index
      %37 = vector.load %arg14[%c0_17, %c0_18] : memref<32x128xf32, #tpu.memory_space<vmem>>, vector<32x128xf32>
      tpu.vector_store %arg14[%c0_17, %c0_18], %36 {strides = array<i32>} : memref<32x128xf32, #tpu.memory_space<vmem>>, vector<32x128xf32>,
    } else {
    }
    %c0_i32_2 = arith.constant 0 : i32
    %5 = arith.cmpi eq, %arg2, %c0_i32_2 : i32
    %6 = arith.extui %5 : i1 to i32
    %c0_i32_3 = arith.constant 0 : i32
    %7 = arith.cmpi ne, %6, %c0_i32_3 : i32
    scf.if %7 {
      %cst = arith.constant 0.000000e+00 : f32
      %31 = vector.broadcast %cst : f32 to vector<32x32xf32>
      %c0 = arith.constant 0 : index
      %c0_12 = arith.constant 0 : index
      %32 = vector.load %arg15[%c0, %c0_12] : memref<32x32xf32, #tpu.memory_space<vmem>>, vector<32x32xf32>
      tpu.vector_store %arg15[%c0, %c0_12], %31 {strides = array<i32>} : memref<32x32xf32, #tpu.memory_space<vmem>>, vector<32x32xf32>,
    } else {
    }
    %c3_i32 = arith.constant 3 : i32
    %8 = arith.muli %arg0, %c3_i32 : i32
    %9 = arith.addi %8, %arg1 : i32
    %c1_i32 = arith.constant 1 : i32
    %10 = arith.muli %9, %c1_i32 : i32
    %11 = arith.addi %10, %arg2 : i32
    %12 = arith.index_cast %11 : i32 to index
    %13 = memref.load %arg3[%12] : memref<6xi32, #tpu.memory_space<smem>>
    %c0_i32_4 = arith.constant 0 : i32
    %14 = arith.cmpi ne, %13, %c0_i32_4 : i32
    %15 = arith.extui %14 : i1 to i32
    %c0_i32_5 = arith.constant 0 : i32
    %16 = arith.cmpi ne, %15, %c0_i32_5 : i32
    scf.if %16 {
      %c0 = arith.constant 0 : index
      %c0_12 = arith.constant 0 : index
      %31 = vector.load %arg15[%c0, %c0_12] : memref<32x32xf32, #tpu.memory_space<vmem>>, vector<32x32xf32>
      %c0_13 = arith.constant 0 : index
      %c0_14 = arith.constant 0 : index
      %c0_15 = arith.constant 0 : index
      %32 = vector.load %arg7[%c0_13, %c0_14, %c0_15] : memref<1x32x128xbf16, #tpu.memory_space<vmem>>, vector<1x32x128xbf16>
      %33 = vector.shape_cast %32 : vector<1x32x128xbf16> to vector<32x128xbf16>
      %c0_16 = arith.constant 0 : index
      %c0_17 = arith.constant 0 : index
      %34 = vector.load %arg8[%c0_16, %c0_17] : memref<128x32xbf16, #tpu.memory_space<vmem>>, vector<128x32xbf16>
      %cst = arith.constant dense<0.000000e+00> : vector<32x32xf32>
      %35 = tpu.matmul %33, %34, %cst {dimension_numbers = #tpu.dot_dimension_numbers<[1], [0], [0], [1], [0, 0, 1, 1], [], []>} : vector<32x128xbf16>, vector<128x32xbf16>, vector<32x32xf32> -> vector<32x32xf32>
      %36 = arith.addf %31, %35 : vector<32x32xf32>
      %c0_18 = arith.constant 0 : index
      %c0_19 = arith.constant 0 : index
      %37 = vector.load %arg15[%c0_18, %c0_19] : memref<32x32xf32, #tpu.memory_space<vmem>>, vector<32x32xf32>
      tpu.vector_store %arg15[%c0_18, %c0_19], %36 {strides = array<i32>} : memref<32x32xf32, #tpu.memory_space<vmem>>, vector<32x32xf32>,
    } else {
    }
    %c3_i32_6 = arith.constant 3 : i32
    %17 = arith.muli %arg0, %c3_i32_6 : i32
    %18 = arith.addi %17, %arg1 : i32
    %19 = arith.index_cast %18 : i32 to index
    %20 = memref.load %arg4[%19] : memref<6xi32, #tpu.memory_space<smem>>
    %c0_i32_7 = arith.constant 0 : i32
    %21 = arith.cmpi eq, %arg2, %c0_i32_7 : i32
    %c0_i32_8 = arith.constant 0 : i32
    %22 = arith.cmpi ne, %20, %c0_i32_8 : i32
    %23 = arith.andi %21, %22 : i1
    %24 = arith.extui %23 : i1 to i32
    %c0_i32_9 = arith.constant 0 : i32
    %25 = arith.cmpi ne, %24, %c0_i32_9 : i32
    scf.if %25 {
      %c0 = arith.constant 0 : index
      %c0_12 = arith.constant 0 : index
      %31 = vector.load %arg14[%c0, %c0_12] : memref<32x128xf32, #tpu.memory_space<vmem>>, vector<32x128xf32>
      %c0_13 = arith.constant 0 : index
      %c0_14 = arith.constant 0 : index
      %32 = vector.load %arg15[%c0_13, %c0_14] : memref<32x32xf32, #tpu.memory_space<vmem>>, vector<32x32xf32>
      %33 = arith.truncf %32 : vector<32x32xf32> to vector<32x32xbf16>
      %c0_15 = arith.constant 0 : index
      %c0_16 = arith.constant 0 : index
      %c0_17 = arith.constant 0 : index
      %34 = vector.load %arg9[%c0_15, %c0_16, %c0_17] : memref<1x32x128xbf16, #tpu.memory_space<vmem>>, vector<1x32x128xbf16>
      %35 = vector.shape_cast %34 : vector<1x32x128xbf16> to vector<32x128xbf16>
      %cst = arith.constant dense<0.000000e+00> : vector<32x128xf32>
      %36 = tpu.matmul %33, %35, %cst {dimension_numbers = #tpu.dot_dimension_numbers<[1], [0], [0], [1], [0, 0, 1, 1], [], []>} : vector<32x32xbf16>, vector<32x128xbf16>, vector<32x128xf32> -> vector<32x128xf32>
      %37 = arith.addf %31, %36 : vector<32x128xf32>
      %c0_18 = arith.constant 0 : index
      %c0_19 = arith.constant 0 : index
      %38 = vector.load %arg14[%c0_18, %c0_19] : memref<32x128xf32, #tpu.memory_space<vmem>>, vector<32x128xf32>
      tpu.vector_store %arg14[%c0_18, %c0_19], %37 {strides = array<i32>} : memref<32x128xf32, #tpu.memory_space<vmem>>, vector<32x128xf32>,
    } else {
    }
    %c2_i32 = arith.constant 2 : i32
    %26 = arith.cmpi eq, %arg1, %c2_i32 : i32
    %c0_i32_10 = arith.constant 0 : i32
    %27 = arith.cmpi eq, %arg2, %c0_i32_10 : i32
    %28 = arith.andi %26, %27 : i1
    %29 = arith.extui %28 : i1 to i32
    %c0_i32_11 = arith.constant 0 : i32
    %30 = arith.cmpi ne, %29, %c0_i32_11 : i32
    scf.if %30 {
      %c0 = arith.constant 0 : index
      %c0_12 = arith.constant 0 : index
      %31 = vector.load %arg14[%c0, %c0_12] : memref<32x128xf32, #tpu.memory_space<vmem>>, vector<32x128xf32>
      %cst = arith.constant 0.000000e+00 : f32
      %32 = vector.broadcast %cst : f32 to vector<32x128xf32>
      %33 = arith.maximumf %31, %32 : vector<32x128xf32>
      %c0_13 = arith.constant 0 : index
      %c0_14 = arith.constant 0 : index
      %34 = vector.load %arg13[%c0_13, %c0_14] : memref<32x128xf32, #tpu.memory_space<vmem>>, vector<32x128xf32>
      tpu.vector_store %arg13[%c0_13, %c0_14], %33 {strides = array<i32>} : memref<32x128xf32, #tpu.memory_space<vmem>>, vector<32x128xf32>,
    } else {
    }
    return
  }
  func.func @transform_0(%arg0: i32, %arg1: i32, %arg2: i32, %arg3: memref<6xi32, #tpu.memory_space<smem>>, %arg4: memref<6xi32, #tpu.memory_space<smem>>, %arg5: memref<6xi32, #tpu.memory_space<smem>>, %arg6: memref<6xi32, #tpu.memory_space<smem>>) -> (i32, i32, i32) {
    %c3_i32 = arith.constant 3 : i32
    %0 = arith.muli %arg0, %c3_i32 : i32
    %1 = arith.addi %0, %arg1 : i32
    %c1_i32 = arith.constant 1 : i32
    %2 = arith.muli %1, %c1_i32 : i32
    %3 = arith.addi %2, %arg2 : i32
    %4 = arith.index_cast %3 : i32 to index
    %5 = memref.load %arg5[%4] : memref<6xi32, #tpu.memory_space<smem>>
    %6 = arith.index_cast %3 : i32 to index
    %7 = memref.load %arg6[%6] : memref<6xi32, #tpu.memory_space<smem>>
    %c0_i32 = arith.constant 0 : i32
    return %5, %arg0, %7 : i32, i32, i32
  }
  func.func @transform_1(%arg0: i32, %arg1: i32, %arg2: i32, %arg3: memref<6xi32, #tpu.memory_space<smem>>, %arg4: memref<6xi32, #tpu.memory_space<smem>>, %arg5: memref<6xi32, #tpu.memory_space<smem>>, %arg6: memref<6xi32, #tpu.memory_space<smem>>) -> (i32, i32) {
    %c3_i32 = arith.constant 3 : i32
    %0 = arith.muli %arg0, %c3_i32 : i32
    %1 = arith.addi %0, %arg1 : i32
    %c1_i32 = arith.constant 1 : i32
    %2 = arith.muli %1, %c1_i32 : i32
    %3 = arith.addi %2, %arg2 : i32
    %4 = arith.index_cast %3 : i32 to index
    %5 = memref.load %arg6[%4] : memref<6xi32, #tpu.memory_space<smem>>
    %c0_i32 = arith.constant 0 : i32
    %c0_i32_0 = arith.constant 0 : i32
    return %5, %c0_i32 : i32, i32
  }
  func.func @transform_2(%arg0: i32, %arg1: i32, %arg2: i32, %arg3: memref<6xi32, #tpu.memory_space<smem>>, %arg4: memref<6xi32, #tpu.memory_space<smem>>, %arg5: memref<6xi32, #tpu.memory_space<smem>>, %arg6: memref<6xi32, #tpu.memory_space<smem>>) -> (i32, i32, i32) {
    %c0_i32 = arith.constant 0 : i32
    %c0_i32_0 = arith.constant 0 : i32
    %c0_i32_1 = arith.constant 0 : i32
    return %arg1, %c0_i32, %c0_i32_0 : i32, i32, i32
  }
  func.func @transform_3(%arg0: i32, %arg1: i32, %arg2: i32, %arg3: memref<6xi32, #tpu.memory_space<smem>>, %arg4: memref<6xi32, #tpu.memory_space<smem>>, %arg5: memref<6xi32, #tpu.memory_space<smem>>, %arg6: memref<6xi32, #tpu.memory_space<smem>>) -> (i32, i32) {
    %c0_i32 = arith.constant 0 : i32
    %c0_i32_0 = arith.constant 0 : i32
    return %arg0, %c0_i32 : i32, i32
  }
  func.func @transform_4(%arg0: i32, %arg1: i32, %arg2: i32, %arg3: memref<6xi32, #tpu.memory_space<smem>>, %arg4: memref<6xi32, #tpu.memory_space<smem>>, %arg5: memref<6xi32, #tpu.memory_space<smem>>, %arg6: memref<6xi32, #tpu.memory_space<smem>>) -> (i32, i32) {
    %c0_i32 = arith.constant 0 : i32
    %c0_i32_0 = arith.constant 0 : i32
    %c0_i32_1 = arith.constant 0 : i32
    return %c0_i32, %c0_i32_0 : i32, i32
  }
  func.func @transform_5(%arg0: i32, %arg1: i32, %arg2: i32, %arg3: memref<6xi32, #tpu.memory_space<smem>>, %arg4: memref<6xi32, #tpu.memory_space<smem>>, %arg5: memref<6xi32, #tpu.memory_space<smem>>, %arg6: memref<6xi32, #tpu.memory_space<smem>>) -> (i32, i32) {
    %c0_i32 = arith.constant 0 : i32
    %c0_i32_0 = arith.constant 0 : i32
    %c0_i32_1 = arith.constant 0 : i32
    return %c0_i32, %c0_i32_0 : i32, i32
  }
  func.func @transform_6(%arg0: i32, %arg1: i32, %arg2: i32, %arg3: memref<6xi32, #tpu.memory_space<smem>>, %arg4: memref<6xi32, #tpu.memory_space<smem>>, %arg5: memref<6xi32, #tpu.memory_space<smem>>, %arg6: memref<6xi32, #tpu.memory_space<smem>>) -> (i32, i32) {
    %c0_i32 = arith.constant 0 : i32
    %c0_i32_0 = arith.constant 0 : i32
    return %arg0, %c0_i32 : i32, i32
  }
}

</mosaic_0001>

<bundles_post_ra>
// kernel: tpu_custom_call.1
= control target key start
LH: loop header
LB: loop body
LE: loop exit
PB: predicated region body
PF: predicated region fallthrough
CT: control target
= control target key end

     0   :  { %s1350_s19 = smov [#allocation5]   ;;  %s1351_s20 = smov [#allocation6]   ;;  %s1665_s0 = inlined_call_operand.hbm [shape: s32[6], index: 0, kind: input, shape index: {}]   ;;  %s1666_s4 = inlined_call_operand.vmem [shape: bf16[3,64,128], index: 4, kind: input, shape index: {}]   ;;  %s1667_s5 = inlined_call_operand.vmem [shape: bf16[128,32], index: 5, kind: input, shape index: {}]   ;;  %s1668_s6 = inlined_call_operand.hbm [shape: bf16[3,32,128], index: 6, kind: input, shape index: {}]   ;;  %s1669_s7 = inlined_call_operand.vmem [shape: bf16[64,32], index: 7, kind: input, shape index: {}]   ;;  %s1670_s8 = inlined_call_operand.vmem [shape: bf16[32,128], index: 8, kind: input, shape index: {}]   ;;  %s1671_s9 = inlined_call_operand.vmem [shape: f32[1,128], index: 9, kind: input, shape index: {}]   ;;  %s1672_s10 = inlined_call_operand.hbm [shape: f32[64,128], index: 10, kind: output, shape index: {}]   ;;  %s1673_s1 = inlined_call_operand.hbm [shape: s32[6], index: 1, kind: input, shape index: {}]   ;;  %s1674_s2 = inlined_call_operand.vmem [shape: s32[6], index: 2, kind: input, shape index: {}]   ;;  %s1675_s3 = inlined_call_operand.hbm [shape: s32[6], index: 3, kind: input, shape index: {}]  }
   0x1   :  { %1688 = sst [smem:[#allocation28_spill]] %s1668_s6  ;;  %s16_s15 = sshll.u32 %s1665_s0, 4  ;;  %s17_s15 = int_to_ptr.hbm [resolvable:$true] %s16_s15 }
   0x2   :  { %s21_s18 = sshll.u32 %s1673_s1, 4  ;;  %s26_s23 = sshll.u32 %s1674_s2, 4  ;;  %s22_s18 = int_to_ptr.hbm [resolvable:$true] %s21_s18  ;;  %s27_s23 = int_to_ptr.vmem [resolvable:$true] %s26_s23 }
   0x3   :  { %19 = dma.hbm_to_smem %s17_s15, 16, %s1350_s19, [#allocation4] }
   0x4   :  { %24 = dma.hbm_to_smem %s22_s18, 16, %s1351_s20, [#allocation4] }
   0x5   :  { %s31_s26 = sshll.u32 %s1675_s3, 4  ;;  %s1352_s0 = smov [#allocation7]   ;;  %s32_s26 = int_to_ptr.hbm [resolvable:$true] %s31_s26 }
   0x6   :  { %29 = dma.vmem_to_smem %s27_s23, 16, %s1352_s0, [#allocation4] }
   0x7   :  { %s1353_s27 = smov [#allocation8]  }
   0x8   :  { %34 = dma.hbm_to_smem %s32_s26, 16, %s1353_s27, [#allocation4] }
   0x9   :  { %1296 = dma.done.wait [#allocation4], 64 }
   0xa   :  { %1297 = vsyncadd [#allocation4], 4294967232 }
   0xb   :  { %37 = sfence }
   0xc   :  { %38 = vsyncpa [#allocation10], 0 }
   0xd   :  { %40 = vsyncpa [#allocation10 + $0x1], 0 }
   0xe   :  { %41 = vsyncpa [#allocation11], 0 }
   0xf   :  { %43 = vsyncpa [#allocation11 + $0x1], 0  ;;  %s1426_s1 = smov 0   ;;  %s1428_s2 = smov 0  }
  0x10   :  { %s1430_s28 = smov 0   ;;  %s1432_s29 = smov 0  }
  0x11   :  { %s1434_s3 = smov 0   ;;  %s1436_s30 = smov 0  }
  0x12   :  { %s1438_s11 = smov 0   ;;  %s1440_s12 = smov 0  }
  0x13   :  { %s1442_s13 = smov 0   ;;  %s1444_s14 = smov 0  }
  0x14   :  { %s1446_s15 = smov 0  }
  0x15 LB: > { %1689 = sst [smem:[#allocation16_spill]] %s1308_s1  ;;  %s907_s16 = sadd.s32 4294967295, %s1348_s15   ;;  %s1348_s15 = sphi %s1446_s15, %s49_s15   ;;  %s1344_s14 = sphi %s1444_s14, %s1720_s14   ;;  %s1340_s13 = sphi %s1442_s13, %s1723_s13   ;;  %s1336_s12 = sphi %s1440_s12, %s1718_s12   ;;  %s1332_s11 = sphi %s1438_s11, %s1717_s11   ;;  %s1328_s30 = sphi %s1436_s30, %s1716_s30   ;;  %s1324_s3 = sphi %s1434_s3, %s1715_s3   ;;  %s1320_s29 = sphi %s1432_s29, %s1714_s29   ;;  %s1316_s28 = sphi %s1430_s28, %s1713_s28   ;;  %s1312_s2 = sphi %s1428_s2, %s1722_s2   ;;  %s1308_s1 = sphi %s1426_s1, %s1721_s1  }
  0x16   : > { %1690 = sst [smem:[#allocation17_spill]] %s1316_s28  ;;  %s908_s17 = sadd.s32 4294967294, %s1348_s15  }
  0x17   : > { %1691 = sst [smem:[#allocation18_spill]] %s1324_s3  ;;  %s64_s18 = sadd.s32 1, %s1340_s13 }
  0x18   : > { %1692 = sst [smem:[#allocation19_spill]] %s1328_s30  ;;  %s68_s19 = sadd.s32 1, %s1344_s14 }
  0x19   : > { %1693 = sst [smem:[#allocation20_spill]] %s1340_s13  ;;  %p66_p0 = scmp.ge.s32.totalorder %s64_s18, 3 }
  0x1a   : > { %1694 = sst [smem:[#allocation21_spill]] %s1344_s14  ;;  %s149_s20 = sadd.s32 1, %s1328_s30 }
  0x1b   : > { %1695 = sst [smem:[#allocation22_spill]] %s1348_s15  ;;  %p156_p1 = scmp.ne.s32.totalorder %s1328_s30, %s1324_s3 }
  0x1c   : > { %p157_p2 = scmp.eq.s32.totalorder %s1348_s15, 0  ;;  %s1725_s18 = smov (%p66_p0, %s64_s18), 0 }
  0x1d   : > { %1696 = sst [smem:[#allocation23_spill]] %s1725_s18  ;;  %s1727_s19 = smov (!%p66_p0, %s68_s19), %s1344_s14 }
  0x1e   : > { %s146_s21 = ssub.s32 %s1340_s13, %s1725_s18  ;;  %p1492_p3 = por %p157_p2, %p156_p1 }
  0x1f   : > { %p70_p4 = scmp.ge.s32.totalorder %s1727_s19, 2  ;;  %p147_p5 = scmp.eq.s32.totalorder %s146_s21, 0 }
  0x20   : > { %p162_p6 = scmp.ne.s32.totalorder %s1324_s3, %s1320_s29  ;;  %p163_p7 = scmp.eq.s32.totalorder %s907_s16, 0 }
  0x21   : > { %s1729_s19 = smov (%p70_p4, %s1727_s19), 0  ;;  %s243_s26 = sadd.s32 1, %s1316_s28 }
  0x22   : > { %1698 = sst [smem:[#allocation24_spill]] %s1729_s19  ;;  %p1502_p8 = por %p163_p7, %p162_p6 }
  0x23   : > { %s1500_s23 = scalar_select %p147_p5, %s1328_s30, %s149_s20  }
  0x24   : > { %s240_s25 = ssub.s32 %s1344_s14, %s1729_s19  ;;  %p253_p10 = scmp.ne.s32.totalorder %s1316_s28, %s1312_s2 }
  0x25   : > { %1699 = sst [smem:[#allocation25_spill]] %s1500_s23  ;;  %p241_p9 = scmp.eq.s32.totalorder %s240_s25, 0 }
  0x26   : > { %p254_p11 = scmp.eq.s32.totalorder %s907_s16, 5  ;;  %p259_p13 = scmp.ne.s32.totalorder %s1312_s2, %s1308_s1 }
  0x27   : > { %s1512_s0 = scalar_select %p241_p9, %s1316_s28, %s243_s26  }
  0x28   : > { %p1514_p12 = por %p254_p11, %p253_p10  ;;  %p260_p0 = scmp.eq.s32.totalorder %s908_s17, 5 }
  0x29   : > { %1701 = sst [smem:[#allocation26_spill]] %s1512_s0  ;;  %p1046_p1 = scmp.lt.s32.totalorder %s1348_s15, 6 }
  0x2a   : > { %s329_s29 = sand.u32 1, %s1328_s30   ;;  %p1522_p2 = por %p260_p0, %p259_p13 }
  0x2b   : > { %s911_s21 = sshll.u32 %s329_s29, 4  ;;  %s1001_s25 = sshll.u32 %s1340_s13, 4 }
  0x2c   : > { %s1703_s20 = scalar_select %p1522_p2, 1, 0 }
  0x2d   : > { %s1705_s6 = sld [smem:[#allocation28_spill]]  ;;  %s333_s14 = scalar_lea.vmem [#allocation9], %s911_s21 }
  0x2e   : > { %1704 = sst [smem:[#allocation27_spill]] %s1703_s20  ;;  %s341_s23 = sshll.u32 %s333_s14, 4  ;;  %s342_s23 = int_to_ptr.vmem [resolvable:$true] %s341_s23 }
  0x2f   : > { %p1039_p4 = pnand %p1046_p1, %p1492_p3  ;;  %p914_p5 = scmp.ge.s32.totalorder %s1348_s15, 1 }
  0x30   : > { %p358_p6 = scmp.lt.s32.totalorder %s1348_s15, 7  ;;  %s330_s17 = scalar_lea.sflag [#allocation10], %s329_s29 }
  0x31   : > { %s1354_s30 = smov 64   ;;  %s1355_s0 = smov 4  }
  0x32   : > { %p359_p7 = pnand %p914_p5, %p358_p6 }
  0x33   : > { %s338_s26 = scalar_lea.hbm %s1705_s6, %s1001_s25  ;;  %s364_s13 = sand.u32 (!%p359_p7), 1, %s1324_s3  }
  0x34   : > { %s339_s18 = sshll.u32 %s338_s26, 4  ;;  %362 = sbr.rel (%p359_p7) target bundleno = 571 (0x23b), region = 44  ;;  %s340_s18 = int_to_ptr.hbm [resolvable:$true] %s339_s18 }
  0x35   : > { %1041 = dma.hbm_to_vmem [thread:$0]  (!%p1039_p4), %s340_s18, 256, %s342_s23, %s330_s17, %s1354_s30, %s1354_s30, %s1355_s0  }
  0x36   : > { %s1535_s19 = sshll.u32 (!%p359_p7), %s364_s13, 4  ;;  %s365_s21 = scalar_lea.sflag (!%p359_p7), [#allocation10], %s364_s13 }
  0x39   : > { %1299 = dma.done.wait (%p1502_p8), %s365_s21, 256  }
  0x3a   : > { %1301 = vsyncadd (%p1502_p8), %s365_s21, 4294967040  ;;  %s429_s30 = smul.u32 3, %s1336_s12  ;;  %s917_s18 = sshll.u32 %s1336_s12, 2 }
  0x3b   : > { %p437_p3 = scmp.lt.s32.totalorder %s917_s18, 7  ;;  %s1681_s22 = sand.u32 1, %s1312_s2  }
  0x3c   : > { %s1546_s23 = sadd.s32 %s1332_s11, %s429_s30  ;;  %s916_s13 = sshll.u32 %s1681_s22, 5 }
  0x3d   : > { %s432_s0 = sld [smem:[#allocation7 + %s1546_s23]]  ;;  %p474_p8 = scmp.eq.s32.totalorder %s1332_s11, 0 }
  0x3e   : > { %s433_s24 = sld [smem:[#allocation8 + %s1546_s23]]  ;;  %s1731_s18 = smov (!%p437_p3, %s917_s18), 7  ;;  %v1006_v0 = vld [vmem:[%s1670_s8 + $0x8] sm:$0xff] (%p474_p8)  ;;  %v1005_v1 = vld [vmem:[%s1670_s8] sm:$0xff] (%p474_p8)  ;;  %vm511_vm0 = vcmask (%p474_p8), 261120  }
  0x3f   : > { %s455_s29 = sld [smem:[#allocation8 + %s1546_s23]]  ;;  %s923_s25 = sshll.u32 %s1731_s18, 2  ;;  %524 = vmatpush.bf16.msra.mxu0 (%p474_p8), %v1006_v0  ;;  %1022 = vmatpush.bf16.msra.mxu1 (%p474_p8), %v1006_v0  ;;  %v1145_v4 = vld [vmem:[%s1671_s9] ss:$0 sm:$0xff] (%p474_p8) }
  0x40   : > { %s470_s17 = scalar_lea.vmem %s1669_s7, %s923_s25  ;;  %s1567_s26 = scalar_lea.vmem [#allocation12], %s916_s13 }
  0x41   : > { %v1003_v2 = vld [vmem:[%s470_s17] sm:$0xff] (%p474_p8)  ;;  %v1004_v3 = vld [vmem:[%s470_s17 + $0x8] sm:$0xff] (%p474_p8) }
  0x43   : > { %p435_p9 = scmp.lt.s32.totalorder %s432_s0, 2  ;;  %525 = vmatpush.bf16.msra.mxu0 (%p474_p8), %v1005_v1  ;;  %1023 = vmatpush.bf16.msra.mxu1 (%p474_p8), %v1005_v1 }
  0x44   : > { %p439_p10 = scmp.lt.s32.totalorder %s433_s24, 0 }
  0x45   : > { %s1733_s0 = smov (!%p435_p9, %s432_s0), 2  ;;  %s920_s30 = sshll.u32 %s455_s29, 4 }
  0x46   : > { %s1735_s24 = smov (!%p439_p10, %s433_s24), 0  ;;  %s918_s21 = sshll.u32 %s1733_s0, 3  ;;  %941 = vmatmul.msk.bf16.vlgmr.msra.gmra.mxu0 (%p474_p8), %vm511_vm0, %v1003_v2  ;;  %942 = vmatmul.msk.bf16.vlgmr.msra.gmra.mxu1 (%p474_p8), %vm511_vm0, %v1004_v3 }
  0x47   : > { %s441_s14 = sadd.s32 %s1735_s24, %s1731_s18  ;;  %p457_p11 = scmp.lt.s32.totalorder %s920_s30, 15 }
  0x48   : > { %s443_s6 = sadd.s32 %s918_s21, %s441_s14  ;;  %479 = sbr.rel (!%p474_p8) target bundleno = 208 (0xd0), region = 52 }
  0x49   : > { %s919_s22 = sshll.u32 %s443_s6, 2  ;;  %s1737_s30 = smov (!%p457_p11, %s920_s30), 15 }
  0x4a   : > { %s1560_s20 = scalar_lea.vmem %s1666_s4, %s919_s22  ;;  %s921_s1 = sshll.u32 %s1737_s30, 2 }
  0x4b   : > { %s1565_s25 = scalar_lea.vmem %s1667_s5, %s921_s1 }
  0xc3   : > { %v527_v5 = vpop.f32.mrf.mxu0  ;;  %v532_v6 = vpop.f32.mrf.mxu1 }
  0xc4   : > { %v540_v7 = vadd.f32 %v1145_v4, %v527_v5  ;;  %v542_v8 = vadd.f32 %v1145_v4, %v532_v6 }
  0xc6   : > { %544 = vst [vmem:[#allocation2 + $0x10] sm:$0xff] %v540_v7 }
  0xc7   : > { %546 = vst [vmem:[#allocation2 + $0x18] sm:$0xff] %v542_v8 }
  0xcb   : > { %v529_v9 = vpop.f32.mrf.mxu0  ;;  %v534_v10 = vpop.f32.mrf.mxu1 }
  0xcc   : > { %v541_v11 = vadd.f32 %v1145_v4, %v529_v9  ;;  %v543_v12 = vadd.f32 %v1145_v4, %v534_v10 }
  0xce   : > { %545 = vst [vmem:[#allocation2] sm:$0xff] %v541_v11 }
  0xcf   : > { %547 = vst [vmem:[#allocation2 + $0x8] sm:$0xff] %v543_v12 }
  0xd0 PF: > { %vm551_vm1 = vcmask 261120   ;;  %s559_s15 = sld [smem:[#allocation5 + %s1546_s23]]  ;;  %v1356_v13 = vmov 0.0  }
  0xd1   : > { %552 = vst.msk [vmem:[#allocation3] sm:$0xff] %vm551_vm1, %v1356_v13 }
  0xd2   : > { %553 = vst.msk [vmem:[#allocation3 + $0x8] sm:$0xff] %vm551_vm1, %v1356_v13 }
  0xd3   : > { %554 = vst.msk [vmem:[#allocation3 + $0x10] sm:$0xff] %vm551_vm1, %v1356_v13 }
  0xd4   : > { %555 = vst.msk [vmem:[#allocation3 + $0x18] sm:$0xff] %vm551_vm1, %v1356_v13 }
  0xd6   : > { %p943_p13 = scmp.eq.s32.totalorder %s559_s15, 0 }
  0xd8   : > { %563 = sbr.rel (%p943_p13) target bundleno = 391 (0x187), region = 60 }
  0xdd   : > { %v1016_v14 = vld [vmem:[%s1565_s25 + $0x38] sm:$0xff]  ;;  %v1015_v15 = vld [vmem:[%s1565_s25 + $0x30] sm:$0xff]  ;;  %v1014_v16 = vld [vmem:[%s1565_s25 + $0x28] sm:$0xff] }
  0xde   : > { %648 = vmatpush.bf16.msra.mxu0 %v1016_v14  ;;  %1024 = vmatpush.bf16.msra.mxu1 %v1016_v14  ;;  %v1013_v17 = vld [vmem:[%s1565_s25 + $0x20] sm:$0xff]  ;;  %v1012_v18 = vld [vmem:[%s1565_s25 + $0x18] sm:$0xff]  ;;  %v1011_v19 = vld [vmem:[%s1565_s25 + $0x10] sm:$0xff] }
  0xdf   : > { %v1010_v20 = vld [vmem:[%s1565_s25 + $0x8] sm:$0xff]  ;;  %v1009_v21 = vld [vmem:[%s1565_s25] sm:$0xff]  ;;  %v566_v25 = vld [vmem:[#allocation3 + $0x10] sm:$0xff] }
  0xe0   : > { %v1007_v22 = vld [vmem:[%s1560_s20] sm:$0xff]  ;;  %v1008_v23 = vld [vmem:[%s1560_s20 + $0x8] sm:$0xff]  ;;  %v567_v31 = vld [vmem:[#allocation3 + $0x18] sm:$0xff] }
  0xe1   : > { %v564_v24 = vld [vmem:[#allocation3] sm:$0xff]  ;;  %v565_v30 = vld [vmem:[#allocation3 + $0x8] sm:$0xff] }
  0xe2   : > { %649 = vmatpush.bf16.msra.mxu0 %v1015_v15  ;;  %1025 = vmatpush.bf16.msra.mxu1 %v1015_v15 }
  0xe6   : > { %650 = vmatpush.bf16.msra.mxu0 %v1014_v16  ;;  %1026 = vmatpush.bf16.msra.mxu1 %v1014_v16 }
  0xea   : > { %651 = vmatpush.bf16.msra.mxu0 %v1013_v17  ;;  %1027 = vmatpush.bf16.msra.mxu1 %v1013_v17 }
  0xee   : > { %652 = vmatpush.bf16.msra.mxu0 %v1012_v18  ;;  %1028 = vmatpush.bf16.msra.mxu1 %v1012_v18 }
  0xf2   : > { %653 = vmatpush.bf16.msra.mxu0 %v1011_v19  ;;  %1029 = vmatpush.bf16.msra.mxu1 %v1011_v19 }
  0xf6   : > { %654 = vmatpush.bf16.msra.mxu0 %v1010_v20  ;;  %1030 = vmatpush.bf16.msra.mxu1 %v1010_v20 }
  0xfa   : > { %655 = vmatpush.bf16.msra.mxu0 %v1009_v21  ;;  %1031 = vmatpush.bf16.msra.mxu1 %v1009_v21 }
  0xfd   : > { %656 = vmatmul.bf16.vlgmr.msra.gmra.mxu0 %v1007_v22  ;;  %661 = vmatmul.bf16.vlgmr.msra.gmra.mxu1 %v1008_v23 }
 0x17a   : > { %v657_v26 = vpop.f32.mrf.mxu0  ;;  %v662_v27 = vpop.f32.mrf.mxu1 }
 0x17b   : > { %v667_v28 = vadd.f32 %v657_v26, %v564_v24  ;;  %v669_v29 = vadd.f32 %v662_v27, %v566_v25 }
 0x17d   : > { %672 = vst.msk [vmem:[#allocation3] sm:$0xff] %vm551_vm1, %v667_v28 }
 0x17e   : > { %674 = vst.msk [vmem:[#allocation3 + $0x10] sm:$0xff] %vm551_vm1, %v669_v29 }
 0x182   : > { %v659_v32 = vpop.f32.mrf.mxu0  ;;  %v664_v33 = vpop.f32.mrf.mxu1 }
 0x183   : > { %v668_v34 = vadd.f32 %v659_v32, %v565_v30  ;;  %v670_v35 = vadd.f32 %v664_v33, %v567_v31 }
 0x185   : > { %673 = vst.msk [vmem:[#allocation3 + $0x8] sm:$0xff] %vm551_vm1, %v668_v34 }
 0x186   : > { %675 = vst.msk [vmem:[#allocation3 + $0x18] sm:$0xff] %vm551_vm1, %v670_v35 }
 0x187 PF: > { %s676_s20 = sld [smem:[#allocation6 + %s1546_s23]] }
 0x18d   : > { %p677_p0 = scmp.ne.s32.totalorder %s676_s20, 0 }
 0x18e   : > { %s1706_s22 = scalar_lea.vmem (%p677_p0), [#allocation9], %s1535_s19  ;;  %v686_v38 = vld [vmem:[#allocation3] sm:$0xff] (%p677_p0)  ;;  %v687_v39 = vld [vmem:[#allocation3 + $0x8] sm:$0xff] (%p677_p0)  ;;  %v688_v40 = vld [vmem:[#allocation3 + $0x10] sm:$0xff] (%p677_p0) }
 0x18f   : > { %681 = sbr.rel (!%p677_p0) target bundleno = 545 (0x221), region = 64  ;;  %v1019_v36 = vld [vmem:[%s1706_s22 + $0x8] sm:$0xff] (%p677_p0)  ;;  %s1707_s13 = smov (%p677_p0), %s1706_s22  ;;  %v690_v42 = vpack.c.bf16 (%p677_p0), %v687_v39, %v686_v38  ;;  %v682_v44 = vld [vmem:[#allocation2 + $0x10] sm:$0xff] (%p677_p0)  ;;  %v683_v50 = vld [vmem:[#allocation2] sm:$0xff] (%p677_p0) }
 0x190   : > { %v1018_v37 = vld [vmem:[%s1707_s13] sm:$0xff] (%p677_p0)  ;;  %721 = vmatpush.bf16.msra.mxu0 (%p677_p0), %v1019_v36  ;;  %1032 = vmatpush.bf16.msra.mxu1 (%p677_p0), %v1019_v36  ;;  %v689_v41 = vld [vmem:[#allocation3 + $0x18] sm:$0xff] (%p677_p0)  ;;  %v685_v51 = vld [vmem:[#allocation2 + $0x8] sm:$0xff] (%p677_p0) }
 0x191   : > { %v691_v43 = vpack.c.bf16 (%p677_p0), %v689_v41, %v688_v40  ;;  %v684_v45 = vld [vmem:[#allocation2 + $0x18] sm:$0xff] (%p677_p0) }
 0x194   : > { %722 = vmatpush.bf16.msra.mxu0 %v1018_v37  ;;  %1033 = vmatpush.bf16.msra.mxu1 %v1018_v37 }
 0x197   : > { %993 = vmatmul.msk.bf16.vlgmr.msra.gmra.mxu0 %vm551_vm1, %v690_v42  ;;  %994 = vmatmul.msk.bf16.vlgmr.msra.gmra.mxu1 %vm551_vm1, %v691_v43 }
 0x214   : > { %v724_v46 = vpop.f32.mrf.mxu0  ;;  %v729_v47 = vpop.f32.mrf.mxu1 }
 0x215   : > { %v734_v48 = vadd.f32 %v724_v46, %v682_v44  ;;  %v736_v49 = vadd.f32 %v729_v47, %v684_v45 }
 0x217   : > { %738 = vst [vmem:[#allocation2 + $0x10] sm:$0xff] %v734_v48 }
 0x218   : > { %740 = vst [vmem:[#allocation2 + $0x18] sm:$0xff] %v736_v49 }
 0x21c   : > { %v726_v52 = vpop.f32.mrf.mxu0  ;;  %v731_v53 = vpop.f32.mrf.mxu1 }
 0x21d   : > { %v735_v54 = vadd.f32 %v726_v52, %v683_v50  ;;  %v737_v55 = vadd.f32 %v731_v53, %v685_v51 }
 0x21f   : > { %739 = vst [vmem:[#allocation2] sm:$0xff] %v735_v54 }
 0x220   : > { %741 = vst [vmem:[#allocation2 + $0x8] sm:$0xff] %v737_v55 }
 0x221 PF: > { %p742_p1 = scmp.eq.s32.totalorder %s1332_s11, 2 }
 0x222   : > { %v747_v56 = vld [vmem:[#allocation2 + $0x10] sm:$0xff] (%p742_p1)  ;;  %v749_v58 = vld [vmem:[#allocation2 + $0x18] sm:$0xff] (%p742_p1) }
 0x223   : > { %746 = sbr.rel (!%p742_p1) target bundleno = 555 (0x22b), region = 68  ;;  %v751_v59 = vmax.f32 (%p742_p1), %v747_v56, 0.0  ;;  %v753_v61 = vmax.f32 (%p742_p1), %v749_v58, 0.0 }
 0x225   : > { %755 = vst [vmem:[%s1567_s26] sm:$0xff] (%p742_p1), %v751_v59 }
 0x226   : > { %v748_v57 = vld [vmem:[#allocation2] sm:$0xff] (%p742_p1)  ;;  %757 = vst [vmem:[%s1567_s26 + $0x10] sm:$0xff] (%p742_p1), %v753_v61 }
 0x227   : > { %v752_v60 = vmax.f32 (%p742_p1), %v748_v57, 0.0  ;;  %v750_v62 = vld [vmem:[#allocation2 + $0x8] sm:$0xff] (%p742_p1) }
 0x228   : > { %v754_v63 = vmax.f32 %v750_v62, 0.0 }
 0x229   : > { %756 = vst [vmem:[%s1567_s26 + $0x8] sm:$0xff] %v752_v60 }
 0x22a   : > { %758 = vst [vmem:[%s1567_s26 + $0x18] sm:$0xff] %v754_v63 }
 0x22b PF: > { %s1021_s11 = sshll.u32 %s1336_s12, 5  ;;  %s772_s24 = sshll.u32 %s1567_s26, 4  ;;  %s773_s24 = int_to_ptr.vmem [resolvable:$true] %s772_s24 }
 0x22c   : > { %s771_s0 = scalar_lea.hbm %s1672_s10, %s1021_s11  ;;  %s1708_s17 = sand.u32 1, %s1312_s2  }
 0x22d   : > { %s774_s29 = sshll.u32 %s771_s0, 4  ;;  %s760_s21 = scalar_lea.sflag [#allocation11], %s1708_s17  ;;  %s775_s29 = int_to_ptr.hbm [resolvable:$true] %s774_s29 }
 0x22e   : > { %s1238_s30 = sshra.s32 %s775_s29, 4  ;;  %s1244_s12 = scalar_lea.hbm %s1672_s10, 64  ;;  %s1239_s30 = int_to_ptr.hbm [resolvable:$true] %s1238_s30 }
 0x22f   : > { %s1240_s16 = scalar_lea.hbm %s1239_s30, 32  ;;  %p1245_p7 = scmp.lt.s32.totalorder %s1239_s30, %s1672_s10 }
 0x230   : > { %p1241_p4 = scmp.ne.s32.totalorder %s1239_s30, %s1240_s16  ;;  %p1246_p3 = scmp.lt.s32.totalorder %s1244_s12, %s1240_s16 }
 0x232   : > { %p1242_p5 = pnand %p1241_p4, %p1514_p12  ;;  %p1247_p8 = por %p1246_p3, %p1245_p7 }
 0x234   : > { %p1243_p6 = pneg %p1242_p5 }
 0x236   : > { %p1248_p9 = pnand %p1247_p8, %p1243_p6 }
 0x238   : > { %1251 = shalt.err (!%p1248_p9)
}
 0x239   : > { %s1357_s26 = smov 128   ;;  %s1358_s28 = smov 8  }
 0x23a   : > { %1036 = dma.vmem_to_hbm [thread:$0]  (%p1514_p12), %s773_s24, 512, %s775_s29, %s760_s21, %s1357_s26, %s1357_s26, %s1358_s28  }
 0x23b PF: > { %s1709_s1 = sld [smem:[#allocation22_spill]] }
 0x23c   : > { %s1710_s3 = sld [smem:[#allocation16_spill]] }
 0x241   : > { %p1047_p10 = scmp.ge.s32.totalorder %s1709_s1, 2 }
 0x242   : > { %s789_s20 = sand.u32 1, %s1710_s3  }
 0x243   : > { %p1043_p11 = pnand %p1047_p10, %p1522_p2  ;;  %s790_s22 = scalar_lea.sflag [#allocation11], %s789_s20 }
 0x245   : > { %p1044_p13 = pneg %p1043_p11 }
 0x247   : > { %1303 = dma.done.wait (%p1044_p13), %s790_s22, 512  }
 0x248   : > { %1305 = vsyncadd (%p1044_p13), %s790_s22, 4294966784  ;;  %s49_s15 = sadd.s32 1, %s1709_s1   ;;  %s1712_s13 = sld [smem:[#allocation17_spill]] }
 0x249   : > { %p46_p0 = scmp.ge.s32.totalorder %s49_s15, 8   ;;  %s1713_s28 = sld [smem:[#allocation26_spill]] }
 0x24a   : > { %s1714_s29 = sld [smem:[#allocation18_spill]]  ;;  %s1721_s1 = smov %s1312_s2 }
 0x24b   : > { %s1715_s3 = sld [smem:[#allocation19_spill]] }
 0x24c   : > { %s1716_s30 = sld [smem:[#allocation25_spill]] }
 0x24d   : > { %s1717_s11 = sld [smem:[#allocation20_spill]] }
 0x24e   : > { %s1718_s12 = sld [smem:[#allocation21_spill]]  ;;  %s1722_s2 = smov %s1712_s13 }
 0x24f   : > { %s1719_s27 = sld [smem:[#allocation23_spill]] }
 0x250   : > { %s1720_s14 = sld [smem:[#allocation24_spill]] }
 0x251   :  { %48 = sbr.rel (!%p46_p0) target bundleno = 21 (0x15), region = 118 }
 0x255   : > { %s1723_s13 = smov %s1719_s27 }
 0x256   :  { %796 = vsyncpa [#allocation10], 1 }
 0x257   :  { %798 = vsyncpa [#allocation10 + $0x1], 1 }
 0x258   :  { %799 = vsyncpa [#allocation11], 1 }
 0x259   :  { %801 = vsyncpa [#allocation11 + $0x1], 1 }

</bundles_post_ra>
